<compile_context>
chip_gen: v7x
topology: tpu7x:2x2x1
jax: 0.10.0
libtpu: 0.0.40
codegen_flags: <defaults>
</compile_context>

<pallas_src>
import jax
import jax.numpy as jnp
from jax.experimental import pallas as pl
from jax.experimental.pallas import tpu as pltpu

_NEG_BIG = -1e30  # padded-vocab bias: exp(-1e30 - m) underflows to exactly 0


def _sender_kernel(x_ref, w1_ref, w2_ref, b2_ref, o_ref):
    # fc1 (+ folded bias via the ones-column of x) and tanh (EUP).
    h = jnp.tanh(
        jnp.dot(x_ref[...], w1_ref[...], preferred_element_type=jnp.float32)
    )
    # fc3; padded vocab columns get the -1e30 bias and drop out of the softmax.
    logits = (
        jnp.dot(h, w2_ref[...], preferred_element_type=jnp.float32) + b2_ref[...]
    )
    # numerically-stable log_softmax over the (lane-dense) vocab axis.
    m = jnp.max(logits, axis=-1, keepdims=True)
    shifted = logits - m
    lse = jnp.log(jnp.sum(jnp.exp(shifted), axis=-1, keepdims=True))
    o_ref[...] = (shifted - lse).astype(o_ref.dtype)


def _round_up(n, m):
    return ((n + m - 1) // m) * m


def sum_categorical_sender(x, w1, b1, w2, b2):
    """x: [B, F] f32; w1: [F, H]; b1: [1, H]; w2: [H, V]; b2: [1, V] -> [B, V]."""
    B, F = x.shape
    H = w1.shape[1]
    V = w2.shape[1]

    # Lane-aligned padded dims (+1 feature column for the folded fc1 bias).
    Fp = _round_up(F + 1, 128)
    Hp = _round_up(H, 128)
    Vp = _round_up(V, 128)

    # Batch tiling: 128-row tiles for real batches, 8-row minimum for toys.
    TB = 128 if B > 64 else _round_up(B, 8)
    Bp = _round_up(B, TB)

    # Pad inputs.  x gets a ones-column at index F; w1 gets b1 in row F, so
    # fc1's bias rides the matmul.  Padded w2 rows/cols are zero; padded b2
    # columns are -1e30 so the padded logits never influence the logsumexp.
    x_p = (
        jnp.zeros((Bp, Fp), jnp.float32)
        .at[:B, :F].set(x.astype(jnp.float32))
        .at[:B, F].set(1.0)
    )
    w1_p = (
        jnp.zeros((Fp, Hp), jnp.float32)
        .at[:F, :H].set(w1)
        .at[F, :H].set(b1.reshape(-1))
    )
    w2_p = jnp.zeros((Hp, Vp), jnp.float32).at[:H, :V].set(w2)
    b2_p = jnp.full((1, Vp), _NEG_BIG, jnp.float32).at[:, :V].set(b2.reshape(1, -1))

    cost = pl.CostEstimate(
        flops=2 * Bp * (Fp * Hp + Hp * Vp),
        transcendentals=Bp * (Hp + Vp),          # tanh + exp
        bytes_accessed=4 * (Bp * Fp + Fp * Hp + Hp * Vp + Vp + Bp * Vp),
    )

    out = pl.pallas_call(
        _sender_kernel,
        out_shape=jax.ShapeDtypeStruct((Bp, Vp), jnp.float32),
        grid_spec=pltpu.PrefetchScalarGridSpec(
            num_scalar_prefetch=0,
            grid=(Bp // TB,),
            in_specs=[
                pl.BlockSpec((TB, Fp), lambda i: (i, 0)),   # x tile, pipelined
                pl.BlockSpec((Fp, Hp), lambda i: (0, 0)),   # w1 resident
                pl.BlockSpec((Hp, Vp), lambda i: (0, 0)),   # w2 resident
                pl.BlockSpec((1, Vp), lambda i: (0, 0)),    # b2 resident
            ],
            out_specs=pl.BlockSpec((TB, Vp), lambda i: (i, 0)),
        ),
        compiler_params=pltpu.CompilerParams(
            dimension_semantics=("parallel",),   # shard batch across TCs (v7x)
        ),
        cost_estimate=cost,
    )(x_p, w1_p, w2_p, b2_p)

    # Slice away batch / vocab padding.
    return out[:B, :V]


# TODO(synk): if a real deployment ever uses a vocab in the tens of thousands,
# tile the V axis with a second grid dimension + two-pass/online log-softmax to
# respect v7x's 64 MiB VMEM; at current sizes the full (Hp, Vp) block is tiny.


def _reference(x, w1, b1, w2, b2):
    h = jnp.tanh(x @ w1 + b1)
    logits = h @ w2 + b2
    return jax.nn.log_softmax(logits, axis=1)


if __name__ == "__main__":
    # Small shapes consistent with the module's __init__:
    #   n_features=16, n_hidden=32, n_vocab=10, batch=8
    B, F, H, V = 8, 16, 32, 10

    key = jax.random.PRNGKey(0)
    kx, k1, k2, k3, k4 = jax.random.split(key, 5)

    x = jax.random.normal(kx, (B, F), dtype=jnp.float32)

    # torch Linear stores [out, in]; we keep weights pre-transposed to [in, out].
    w1 = jax.random.normal(k1, (F, H), dtype=jnp.float32) * 0.1
    b1 = jax.random.normal(k2, (1, H), dtype=jnp.float32) * 0.1
    w2 = jax.random.normal(k3, (H, V), dtype=jnp.float32) * 0.1
    b2 = jax.random.normal(k4, (1, V), dtype=jnp.float32) * 0.1

    fn = jax.jit(sum_categorical_sender)
    out = fn(x, w1, b1, w2, b2)
    out = jax.block_until_ready(out)

    ref = _reference(x, w1, b1, w2, b2)
    assert out.shape == (B, V)
    assert jnp.allclose(out, ref, atol=1e-5, rtol=1e-5), "mismatch vs reference"

    print("KERNEL_OK")
</pallas_src>

<mosaic_0001>
module attributes {stable_mosaic.version = 11 : i64} {
  func.func @_sender_kernel(%arg0: i32, %arg1: memref<8x128xf32, #tpu.memory_space<vmem>>, %arg2: memref<128x128xf32, #tpu.memory_space<vmem>>, %arg3: memref<128x128xf32, #tpu.memory_space<vmem>>, %arg4: memref<1x128xf32, #tpu.memory_space<vmem>>, %arg5: memref<8x128xf32, #tpu.memory_space<vmem>>) attributes {dimension_semantics = [#tpu.dimension_semantics<parallel>], iteration_bounds = array<i64: 1>, scalar_prefetch = 0 : i64, scratch_operands = 0 : i64, tpu.core_type = #tpu.core_type<tc>, window_params = [{transform_indices = @transform_0, window_bounds = array<i64: 8, 128>}, {pipeline_mode = #tpu.pipeline_mode<synchronous>, transform_indices = @transform_1, window_bounds = array<i64: 128, 128>}, {pipeline_mode = #tpu.pipeline_mode<synchronous>, transform_indices = @transform_2, window_bounds = array<i64: 128, 128>}, {pipeline_mode = #tpu.pipeline_mode<synchronous>, transform_indices = @transform_3, window_bounds = array<i64: 1, 128>}, {transform_indices = @transform_4, window_bounds = array<i64: 8, 128>}]} {
    %c0 = arith.constant 0 : index
    %c0_0 = arith.constant 0 : index
    %0 = vector.load %arg1[%c0, %c0_0] : memref<8x128xf32, #tpu.memory_space<vmem>>, vector<8x128xf32>
    %c0_1 = arith.constant 0 : index
    %c0_2 = arith.constant 0 : index
    %1 = vector.load %arg2[%c0_1, %c0_2] : memref<128x128xf32, #tpu.memory_space<vmem>>, vector<128x128xf32>
    %cst = arith.constant dense<0.000000e+00> : vector<8x128xf32>
    %2 = tpu.matmul %0, %1, %cst {dimension_numbers = #tpu.dot_dimension_numbers<[1], [0], [0], [1], [0, 0, 1, 1], [], []>} : vector<8x128xf32>, vector<128x128xf32>, vector<8x128xf32> -> vector<8x128xf32>
    %3 = math.tanh %2 : vector<8x128xf32>
    %c0_3 = arith.constant 0 : index
    %c0_4 = arith.constant 0 : index
    %4 = vector.load %arg3[%c0_3, %c0_4] : memref<128x128xf32, #tpu.memory_space<vmem>>, vector<128x128xf32>
    %cst_5 = arith.constant dense<0.000000e+00> : vector<8x128xf32>
    %5 = tpu.matmul %3, %4, %cst_5 {dimension_numbers = #tpu.dot_dimension_numbers<[1], [0], [0], [1], [0, 0, 1, 1], [], []>} : vector<8x128xf32>, vector<128x128xf32>, vector<8x128xf32> -> vector<8x128xf32>
    %c0_6 = arith.constant 0 : index
    %c0_7 = arith.constant 0 : index
    %6 = vector.load %arg4[%c0_6, %c0_7] : memref<1x128xf32, #tpu.memory_space<vmem>>, vector<1x128xf32>
    %7 = vector.broadcast %6 : vector<1x128xf32> to vector<8x128xf32>
    %8 = arith.addf %5, %7 : vector<8x128xf32>
    %cst_8 = arith.constant dense<0xFF800000> : vector<8xf32>
    %9 = vector.multi_reduction <maximumf>, %8, %cst_8 [1] : vector<8x128xf32> to vector<8xf32>
    %10 = vector.shape_cast %9 : vector<8xf32> to vector<8x1xf32>
    %11 = vector.broadcast %10 : vector<8x1xf32> to vector<8x128xf32>
    %12 = arith.subf %8, %11 : vector<8x128xf32>
    %13 = math.exp %12 : vector<8x128xf32>
    %cst_9 = arith.constant dense<0.000000e+00> : vector<8xf32>
    %14 = vector.multi_reduction <add>, %13, %cst_9 [1] : vector<8x128xf32> to vector<8xf32>
    %15 = vector.shape_cast %14 : vector<8xf32> to vector<8x1xf32>
    %16 = math.log %15 : vector<8x1xf32>
    %17 = vector.broadcast %16 : vector<8x1xf32> to vector<8x128xf32>
    %18 = arith.subf %12, %17 : vector<8x128xf32>
    %c0_10 = arith.constant 0 : index
    %c0_11 = arith.constant 0 : index
    %19 = vector.load %arg5[%c0_10, %c0_11] : memref<8x128xf32, #tpu.memory_space<vmem>>, vector<8x128xf32>
    tpu.vector_store %arg5[%c0_10, %c0_11], %18 {strides = array<i32>} : memref<8x128xf32, #tpu.memory_space<vmem>>, vector<8x128xf32>,
    return
  }
  func.func @transform_0(%arg0: i32) -> (i32, i32) {
    %c0_i32 = arith.constant 0 : i32
    %c0_i32_0 = arith.constant 0 : i32
    return %arg0, %c0_i32 : i32, i32
  }
  func.func @transform_1(%arg0: i32) -> (i32, i32) {
    %c0_i32 = arith.constant 0 : i32
    %c0_i32_0 = arith.constant 0 : i32
    %c0_i32_1 = arith.constant 0 : i32
    return %c0_i32, %c0_i32_0 : i32, i32
  }
  func.func @transform_2(%arg0: i32) -> (i32, i32) {
    %c0_i32 = arith.constant 0 : i32
    %c0_i32_0 = arith.constant 0 : i32
    %c0_i32_1 = arith.constant 0 : i32
    return %c0_i32, %c0_i32_0 : i32, i32
  }
  func.func @transform_3(%arg0: i32) -> (i32, i32) {
    %c0_i32 = arith.constant 0 : i32
    %c0_i32_0 = arith.constant 0 : i32
    %c0_i32_1 = arith.constant 0 : i32
    return %c0_i32, %c0_i32_0 : i32, i32
  }
  func.func @transform_4(%arg0: i32) -> (i32, i32) {
    %c0_i32 = arith.constant 0 : i32
    %c0_i32_0 = arith.constant 0 : i32
    return %arg0, %c0_i32 : i32, i32
  }
}

</mosaic_0001>

<bundles_post_ra>
// kernel: sum_categorical_sender.1
= control target key start
LH: loop header
LB: loop body
LE: loop exit
PB: predicated region body
PF: predicated region fallthrough
CT: control target
= control target key end

     0   :  { %v411_v3 = vmov 0.0|0.0   ;;  %vm412_vm0 = vmmov 0   ;;  %v413_v6 = vmov 0.0   ;;  %s570_s0 = inlined_call_operand.vmem [shape: f32[8,128], index: 0, kind: input, shape index: {}]   ;;  %s571_s1 = inlined_call_operand.vmem [shape: f32[128,128], index: 1, kind: input, shape index: {}]   ;;  %s572_s2 = inlined_call_operand.vmem [shape: f32[128,128], index: 2, kind: input, shape index: {}]   ;;  %s573_s3 = inlined_call_operand.vmem [shape: f32[1,128], index: 3, kind: input, shape index: {}]   ;;  %s574_s4 = inlined_call_operand.hbm [shape: f32[8,128], index: 4, kind: output, shape index: {}]  }
   0x1   :  { %v19_v0 = vld [vmem:[%s571_s1] sm:$0xff]  ;;  %v20_v1 = vld [vmem:[%s571_s1 + $0x8] sm:$0xff]  ;;  %v21_v2 = vld [vmem:[%s571_s1 + $0x10] sm:$0xff]  ;;  %329 = vmatprep.subr.bf16.mxu0 %v411_v3  ;;  %291 = vmatprep.mubr.msk.f32.mxu0 %vm412_vm0, %v413_v6 }
   0x2   :  { %v330_v4 = vpack.c.bf16 %v20_v1, %v19_v0  ;;  %v22_v5 = vld [vmem:[%s571_s1 + $0x18] sm:$0xff]  ;;  %353 = vmatprep.subr.bf16.mxu1 %v411_v3  ;;  %326 = vmatprep.mubr.msk.f32.mxu1 %vm412_vm0, %v413_v6  ;;  %v23_v8 = vld [vmem:[%s571_s1 + $0x20] sm:$0xff]  ;;  %v24_v9 = vld [vmem:[%s571_s1 + $0x28] sm:$0xff] }
   0x3   :  { %v333_v7 = vpack.c.bf16 %v22_v5, %v21_v2  ;;  %v106_v10 = vld [vmem:[%s572_s2] sm:$0xff]  ;;  %v107_v11 = vld [vmem:[%s572_s2 + $0x8] sm:$0xff]  ;;  %v108_v12 = vld [vmem:[%s572_s2 + $0x10] sm:$0xff]  ;;  %v336_v14 = vpack.c.bf16 %v24_v9, %v23_v8 }
   0x4   :  { %331 = vmatpush3.bf16.msra.mxu0 %v330_v4  ;;  %v109_v13 = vld [vmem:[%s572_s2 + $0x18] sm:$0xff]  ;;  %v354_v15 = vpack.c.bf16 %v107_v11, %v106_v10  ;;  %v25_v16 = vld [vmem:[%s571_s1 + $0x30] sm:$0xff] }
   0x5   :  { %332 = vmatprep.subr.bf16.mxu0 %v411_v3  ;;  %v26_v17 = vld [vmem:[%s571_s1 + $0x38] sm:$0xff]  ;;  %v357_v18 = vpack.c.bf16 %v109_v13, %v108_v12 }
   0x6   :  { %355 = vmatpush3.bf16.msra.mxu1 %v354_v15 }
   0x8   :  { %334 = vmatpush3.bf16.msra.mxu0 %v333_v7 }
   0x9   :  { %335 = vmatprep.subr.bf16.mxu0 %v411_v3 }
   0xa   :  { %9 = vsyncpa [#allocation3], 0  ;;  %356 = vmatprep.subr.bf16.mxu1 %v411_v3  ;;  %v110_v19 = vld [vmem:[%s572_s2 + $0x20] sm:$0xff]  ;;  %v111_v20 = vld [vmem:[%s572_s2 + $0x28] sm:$0xff]  ;;  %v339_v21 = vpack.c.bf16 %v26_v17, %v25_v16 }
   0xb   :  { %v27_v22 = vld [vmem:[%s571_s1 + $0x40] sm:$0xff]  ;;  %v28_v23 = vld [vmem:[%s571_s1 + $0x48] sm:$0xff]  ;;  %358 = vmatpush3.bf16.msra.mxu1 %v357_v18  ;;  %v360_v24 = vpack.c.bf16 %v111_v20, %v110_v19  ;;  %v112_v25 = vld [vmem:[%s572_s2 + $0x30] sm:$0xff] }
   0xc   :  { %337 = vmatpush3.bf16.msra.mxu0 %v336_v14  ;;  %359 = vmatprep.subr.bf16.mxu1 %v411_v3  ;;  %v113_v26 = vld [vmem:[%s572_s2 + $0x38] sm:$0xff]  ;;  %v342_v27 = vpack.c.bf16 %v28_v23, %v27_v22  ;;  %v29_v28 = vld [vmem:[%s571_s1 + $0x50] sm:$0xff]  ;;  %v114_v31 = vld [vmem:[%s572_s2 + $0x40] sm:$0xff] }
   0xd   :  { %338 = vmatprep.subr.bf16.mxu0 %v411_v3  ;;  %v30_v29 = vld [vmem:[%s571_s1 + $0x58] sm:$0xff]  ;;  %v363_v30 = vpack.c.bf16 %v113_v26, %v112_v25  ;;  %v115_v32 = vld [vmem:[%s572_s2 + $0x48] sm:$0xff]  ;;  %v31_v34 = vld [vmem:[%s571_s1 + $0x60] sm:$0xff] }
   0xe   :  { %v345_v33 = vpack.c.bf16 %v30_v29, %v29_v28  ;;  %v32_v35 = vld [vmem:[%s571_s1 + $0x68] sm:$0xff]  ;;  %v366_v36 = vpack.c.bf16 %v115_v32, %v114_v31  ;;  %v33_v38 = vld [vmem:[%s571_s1 + $0x70] sm:$0xff]  ;;  %v34_v39 = vld [vmem:[%s571_s1 + $0x78] sm:$0xff] }
   0xf   :  { %361 = vmatpush3.bf16.msra.mxu1 %v360_v24  ;;  %v348_v37 = vpack.c.bf16 %v32_v35, %v31_v34  ;;  %v351_v40 = vpack.c.bf16 %v34_v39, %v33_v38  ;;  %v18_v41 = vld [vmem:[%s570_s0] sm:$0xff]  ;;  %v116_v42 = vld [vmem:[%s572_s2 + $0x50] sm:$0xff]  ;;  %v117_v43 = vld [vmem:[%s572_s2 + $0x58] sm:$0xff] }
  0x10   :  { %340 = vmatpush3.bf16.msra.mxu0 %v339_v21  ;;  %362 = vmatprep.subr.bf16.mxu1 %v411_v3  ;;  %v369_v44 = vpack.c.bf16 %v117_v43, %v116_v42  ;;  %v118_v45 = vld [vmem:[%s572_s2 + $0x60] sm:$0xff]  ;;  %v119_v46 = vld [vmem:[%s572_s2 + $0x68] sm:$0xff]  ;;  %v120_v48 = vld [vmem:[%s572_s2 + $0x70] sm:$0xff] }
  0x11   :  { %341 = vmatprep.subr.bf16.mxu0 %v411_v3  ;;  %v372_v47 = vpack.c.bf16 %v119_v46, %v118_v45  ;;  %v121_v49 = vld [vmem:[%s572_s2 + $0x78] sm:$0xff]  ;;  %v224_v54 = vld [vmem:[%s573_s3] ss:$0 sm:$0xff]  ;;  %s414_s2 = smov [#allocation2]  }
  0x12   :  { %v375_v50 = vpack.c.bf16 %v121_v49, %v120_v48  ;;  %s216_s29 = sshll.u32 %s414_s2, 4  ;;  %s217_s29 = int_to_ptr.vmem [resolvable:$true] %s216_s29 }
  0x13   :  { %364 = vmatpush3.bf16.msra.mxu1 %v363_v30  ;;  %s387_s3 = scalar_lea.vmem %s217_s29, 128  ;;  %p392_p1 = scmp.lt.s32.totalorder %s217_s29, %s217_s29 }
  0x14   :  { %343 = vmatpush3.bf16.msra.mxu0 %v342_v27  ;;  %365 = vmatprep.subr.bf16.mxu1 %v411_v3  ;;  %p388_p0 = scmp.ne.s32.totalorder %s217_s29, %s387_s3  ;;  %p393_p2 = scmp.lt.s32.totalorder %s387_s3, %s387_s3 }
  0x15   :  { %344 = vmatprep.subr.bf16.mxu0 %v411_v3 }
  0x16   :  { %p394_p3 = por %p393_p2, %p392_p1 }
  0x17   :  { %367 = vmatpush3.bf16.msra.mxu1 %v366_v36 }
  0x18   :  { %346 = vmatpush3.bf16.msra.mxu0 %v345_v33  ;;  %368 = vmatprep.subr.bf16.mxu1 %v411_v3  ;;  %p395_p4 = pnand %p394_p3, %p388_p0 }
  0x19   :  { %347 = vmatprep.subr.bf16.mxu0 %v411_v3 }
  0x1b   :  { %370 = vmatpush3.bf16.msra.mxu1 %v369_v44 }
  0x1c   :  { %349 = vmatpush3.bf16.msra.mxu0 %v348_v37  ;;  %371 = vmatprep.subr.bf16.mxu1 %v411_v3 }
  0x1d   :  { %350 = vmatprep.subr.bf16.mxu0 %v411_v3 }
  0x1f   :  { %373 = vmatpush3.bf16.msra.mxu1 %v372_v47 }
  0x20   :  { %352 = vmatpush3.bf16.msra.mxu0 %v351_v40  ;;  %374 = vmatprep.subr.bf16.mxu1 %v411_v3 }
  0x23   :  { %292 = vmatmul.mubr.f32.vlgmr.msra.gmra.mrb[0].mxu0 %v18_v41  ;;  %376 = vmatpush3.bf16.msra.mxu1 %v375_v50 }
  0xf6   :  { %v101_v51 = vpop.f32.mrb[0].mxu0 }
  0xf7   :  { %381 = vtanh.f32 %v101_v51  ;;  %v293_v52 = vpop.f32.mrb[1].mxu0 }
 0x101   :  { %v382_v53 = vpop.eup %381 }
 0x102   :  { %327 = vmatmul.mubr.f32.vlgmr.msra.gmra.mrb[0].mxu1 %v382_v53 }
 0x1d5   :  { %v195_v55 = vpop.f32.mrb[0].mxu1 }
 0x1d6   :  { %v196_v56 = vadd.f32 %v224_v54, %v195_v55  ;;  %v328_v57 = vpop.f32.mrb[1].mxu1 }
 0x1d8   :  { %199 = vmax.xlane.f32.xlu0 %v196_v56 }
 0x265   :  { %v200_v58 = vpop.xlane.xlu0 %199 }
 0x266   :  { %v201_v59 = vsub.f32 %v196_v56, %v200_v58 }
 0x268   :  { %v202_v60 = vmul.f32 1.442695, %v201_v59 }
 0x26a   :  { %383 = vpow2.f32 %v202_v60 }
 0x274   :  { %v384_v61 = vpop.eup %383 }
 0x275   :  { %204 = vadd.xlane.f32.xlu0 %v384_v61 }
 0x302   :  { %v205_v62 = vpop.xlane.xlu0 %204 }
 0x303   :  { %385 = vlog2.f32 %v205_v62 }
 0x30d   :  { %v386_v63 = vpop.eup %385 }
 0x30e   :  { %v207_v0 = vmul.f32 0.6931472, %v386_v63 }
 0x310   :  { %v208_v1 = vsub.f32 %v201_v59, %v207_v0 }
 0x312   :  { %209 = vst [vmem:[#allocation2] sm:$0xff] %v208_v1 }
 0x313   :  { %398 = shalt.err (!%p395_p4)
}
 0x314   :  { %s399_s6 = scalar_lea.hbm %s574_s4, 128 }
 0x315   :  { %p400_p5 = scmp.ne.s32.totalorder %s574_s4, %s399_s6  ;;  %p403_p6 = scmp.lt.u32.totalorder %s399_s6, %s574_s4 }
 0x317   :  { %p405_p7 = pnand %p403_p6, %p400_p5 }
 0x319   :  { %408 = shalt.err (!%p405_p7)
}
 0x31a   :  { %219 = dma.vmem_to_hbm [thread:$0]  %s217_s29, 128, %s574_s4, [#allocation3]  }
 0x31b   :  { %409 = dma.done.wait [#allocation3], 128  }
 0x31c   :  { %410 = vsyncadd [#allocation3], 4294967168 }
 0x31d   :  { %223 = vsyncpa [#allocation3], 1 }

</bundles_post_ra>
